<compile_context>
chip_gen: v7x
topology: tpu7x:2x2x1
jax: 0.10.0
libtpu: 0.0.40
codegen_flags: <defaults>
</compile_context>

<pallas_src>
import jax
import jax.numpy as jnp
from jax.experimental import pallas as pl
from jax.experimental.pallas import tpu as pltpu

_LANES = 128
_NUM_PARAMS = 4
_NUM_CORES = 2          # leading "parallel" grid axis (v7x has 2 TensorCores)
_DEFAULT_BLOCK_ROWS = 1024


def _make_kernel(*, block_rows, rows, blocks_per_core, inv_b, needs_mask):
    """Kernel factory. All closed-over values are Python scalars (literals)."""
    inner_last = blocks_per_core - 1
    vec_path = (block_rows % 8 == 0)

    def kernel(alpha_ref, pred_ref, targ_ref, out_ref, acc_ref):
        c = pl.program_id(0)          # core-split axis ("parallel")
        i = pl.program_id(1)          # reduction axis ("arbitrary")

        @pl.when(i == 0)
        def _():
            acc_ref[...] = jnp.zeros_like(acc_ref)

        d = pred_ref[...].astype(jnp.float32) - targ_ref[...].astype(jnp.float32)
        dd = d * d

        if needs_mask:
            # Valid slab rows are [0, rows). Blocks past the end (ragged tail
            # or the clamped duplicate block on the 2-way core split) read
            # unspecified data and must contribute nothing.  Pure VPU work,
            # hidden under the HBM-bound DMA.
            row = jax.lax.broadcasted_iota(jnp.int32, dd.shape, 0)
            start = (c * blocks_per_core + i) * block_rows
            dd = jnp.where(start + row < rows, dd, 0.0)

        if vec_path:
            # Elementwise vreg adds only (no cross-lane / cross-sublane work).
            acc_ref[...] += jnp.sum(dd.reshape(block_rows // 8, 8, _LANES), axis=0)
        else:
            # Tiny full-dim block (rows < 8): one-off sublane reduce is fine.
            acc_ref[0:1, :] += jnp.sum(dd, axis=0, keepdims=True)

        @pl.when(i == inner_last)
        def _():
            # Rebuild the 128-lane alpha pattern [a0,a1,a2,a3]*32 from SMEM
            # scalars (no captured array constants, no extra HBM input DMA).
            lane = jax.lax.broadcasted_iota(jnp.int32, (8, _LANES), 1) % _NUM_PARAMS
            aw = jnp.where(lane == 0, alpha_ref[0],
                 jnp.where(lane == 1, alpha_ref[1],
                 jnp.where(lane == 2, alpha_ref[2], alpha_ref[3])))
            out_ref[0] = acc_ref[...] * aw * inv_b

    return kernel


def _to_slab(x, rows):
    """Row-major view of (B,4) as a lane-dense (rows,128) slab.

    Free (bitcast reshape) when 4B % 128 == 0; otherwise only the <128-element
    ragged tail is zero-padded (pred and target pad identically, so the padded
    diff is exactly 0 and contributes nothing).
    """
    flat = x.reshape(-1)
    pad = rows * _LANES - flat.shape[0]
    if pad:
        flat = jnp.pad(flat, (0, pad))
    return flat.reshape(rows, _LANES)


def custom_loss(predicted_parameters, target_parameters, alpha_list=None, *,
                block_rows=_DEFAULT_BLOCK_ROWS):
    """Pallas TPU implementation of CustomLoss.forward."""
    B, P = predicted_parameters.shape
    assert P == _NUM_PARAMS, "CustomLoss expects exactly 4 parameter columns"
    if alpha_list is None:
        alpha_list = [1.0] * _NUM_PARAMS
    alpha_arr = jnp.asarray(alpha_list, dtype=jnp.float32).reshape(_NUM_PARAMS)

    total = B * _NUM_PARAMS
    rows = pl.cdiv(total, _LANES)

    pred = _to_slab(predicted_parameters, rows)
    targ = _to_slab(target_parameters, rows)

    block_rows_eff = min(block_rows, rows)
    if block_rows_eff < rows:
        # Multiple of 32 keeps the block tile-legal for f32/bf16/int8 inputs.
        assert block_rows_eff % 32 == 0, \
            "block_rows must be a multiple of 32 (sublane tiling incl. packed dtypes)"

    num_blocks = pl.cdiv(rows, block_rows_eff)
    blocks_per_core = pl.cdiv(num_blocks, _NUM_CORES)
    last_block = num_blocks - 1
    needs_mask = (_NUM_CORES * blocks_per_core * block_rows_eff) != rows
    inv_b = 1.0 / float(B)

    def in_map(c, i):
        # Clamp so the DMA source block is always in-bounds; the in-kernel row
        # mask zeroes any clamped-duplicate / tail contribution.
        return (jnp.minimum(c * blocks_per_core + i, last_block), 0)

    partials = pl.pallas_call(
        _make_kernel(block_rows=block_rows_eff, rows=rows,
                     blocks_per_core=blocks_per_core, inv_b=inv_b,
                     needs_mask=needs_mask),
        out_shape=jax.ShapeDtypeStruct((_NUM_CORES, 8, _LANES), jnp.float32),
        grid=(_NUM_CORES, blocks_per_core),
        in_specs=[
            pl.BlockSpec(memory_space=pltpu.MemorySpace.SMEM),   # alpha (4,)
            pl.BlockSpec((block_rows_eff, _LANES), in_map),       # pred slab
            pl.BlockSpec((block_rows_eff, _LANES), in_map),       # target slab
        ],
        out_specs=pl.BlockSpec((1, 8, _LANES), lambda c, i: (c, 0, 0)),
        scratch_shapes=[pltpu.VMEM((8, _LANES), jnp.float32)],
        compiler_params=pltpu.CompilerParams(
            dimension_semantics=("parallel", "arbitrary")),
    )(alpha_arr, pred, targ)

    # Tiny epilogue: sum 2*8*128 alpha-weighted, 1/B-scaled partials -> scalar.
    return jnp.sum(partials)


def custom_loss_ref(predicted, target, alpha_list):
    """Pure-JAX reference mirroring the PyTorch module."""
    w = jnp.asarray(alpha_list, dtype=jnp.float32)
    per_col_mse = jnp.mean(
        (predicted.astype(jnp.float32) - target.astype(jnp.float32)) ** 2, axis=0)
    return jnp.sum(w * per_col_mse)


if __name__ == "__main__":
    key = jax.random.PRNGKey(0)
    k1, k2, k3, k4, k5, k6 = jax.random.split(key, 6)
    alpha_list = [1.0, 2.0, 0.5, 1.5]

    # Case 1: tiny batch (single 1-row slab block; second core-slot fully masked).
    B = 8
    p = jax.random.normal(k1, (B, _NUM_PARAMS), dtype=jnp.float32)
    t = jax.random.normal(k2, (B, _NUM_PARAMS), dtype=jnp.float32)
    got = custom_loss(p, t, alpha_list)
    jax.block_until_ready(got)
    ref = custom_loss_ref(p, t, alpha_list)
    assert jnp.allclose(got, ref, rtol=1e-5, atol=1e-6), (got, ref)

    # Case 2: ragged batch + multi-block grid split across the two core-slots,
    # exercising the in-kernel tail mask (no wrapper-side row padding).
    B = 1234
    p = jax.random.normal(k3, (B, _NUM_PARAMS), dtype=jnp.float32)
    t = jax.random.normal(k4, (B, _NUM_PARAMS), dtype=jnp.float32)
    got = custom_loss(p, t, alpha_list, block_rows=32)
    jax.block_until_ready(got)
    ref = custom_loss_ref(p, t, alpha_list)
    assert jnp.allclose(got, ref, rtol=1e-5, atol=1e-5), (got, ref)

    # Case 3: native bf16 passthrough (f32 accumulation happens in-kernel).
    B = 512
    p = jax.random.normal(k5, (B, _NUM_PARAMS), dtype=jnp.float32).astype(jnp.bfloat16)
    t = jax.random.normal(k6, (B, _NUM_PARAMS), dtype=jnp.float32).astype(jnp.bfloat16)
    got = custom_loss(p, t, alpha_list)
    jax.block_until_ready(got)
    ref = custom_loss_ref(p, t, alpha_list)
    assert jnp.allclose(got, ref, rtol=2e-2, atol=2e-2), (got, ref)

    print("KERNEL_OK")
</pallas_src>

<mosaic_0001>
module attributes {stable_mosaic.version = 11 : i64} {
  func.func @kernel(%arg0: i32, %arg1: i32, %arg2: memref<4xf32, #tpu.memory_space<smem>>, %arg3: memref<1x128xf32, #tpu.memory_space<vmem>>, %arg4: memref<1x128xf32, #tpu.memory_space<vmem>>, %arg5: memref<1x8x128xf32, #tpu.memory_space<vmem>>, %arg6: memref<8x128xf32, #tpu.memory_space<vmem>>) attributes {dimension_semantics = [#tpu.dimension_semantics<parallel>, #tpu.dimension_semantics<arbitrary>], iteration_bounds = array<i64: 2, 1>, scalar_prefetch = 0 : i64, scratch_operands = 1 : i64, tpu.core_type = #tpu.core_type<tc>, window_params = [{transform_indices = @transform_0, window_bounds = array<i64: 4>}, {transform_indices = @transform_1, window_bounds = array<i64: 1, 128>}, {transform_indices = @transform_2, window_bounds = array<i64: 1, 128>}, {transform_indices = @transform_3, window_bounds = array<i64: 1, 8, 128>}]} {
    %c0_i32 = arith.constant 0 : i32
    %0 = arith.cmpi eq, %arg1, %c0_i32 : i32
    %1 = arith.extui %0 : i1 to i32
    %c0_i32_0 = arith.constant 0 : i32
    %2 = arith.cmpi ne, %1, %c0_i32_0 : i32
    scf.if %2 {
      %cst_13 = arith.constant 0.000000e+00 : f32
      %25 = vector.broadcast %cst_13 : f32 to vector<8x128xf32>
      %c0_14 = arith.constant 0 : index
      %c0_15 = arith.constant 0 : index
      %26 = vector.load %arg6[%c0_14, %c0_15] : memref<8x128xf32, #tpu.memory_space<vmem>>, vector<8x128xf32>
      tpu.vector_store %arg6[%c0_14, %c0_15], %25 {strides = array<i32>} : memref<8x128xf32, #tpu.memory_space<vmem>>, vector<8x128xf32>,
    } else {
    }
    %c0 = arith.constant 0 : index
    %c0_1 = arith.constant 0 : index
    %3 = vector.load %arg3[%c0, %c0_1] : memref<1x128xf32, #tpu.memory_space<vmem>>, vector<1x128xf32>
    %c0_2 = arith.constant 0 : index
    %c0_3 = arith.constant 0 : index
    %4 = vector.load %arg4[%c0_2, %c0_3] : memref<1x128xf32, #tpu.memory_space<vmem>>, vector<1x128xf32>
    %5 = arith.subf %3, %4 : vector<1x128xf32>
    %6 = arith.mulf %5, %5 : vector<1x128xf32>
    %7 = tpu.iota {dimensions = array<i32: 0>} : vector<1x128xi32>
    %c1_i32 = arith.constant 1 : i32
    %8 = arith.muli %arg0, %c1_i32 : i32
    %9 = arith.addi %8, %arg1 : i32
    %c1_i32_4 = arith.constant 1 : i32
    %10 = arith.muli %9, %c1_i32_4 : i32
    %11 = vector.broadcast %10 : i32 to vector<1x128xi32>
    %12 = arith.addi %11, %7 : vector<1x128xi32>
    %c1_i32_5 = arith.constant 1 : i32
    %13 = vector.broadcast %c1_i32_5 : i32 to vector<1x128xi32>
    %14 = arith.cmpi slt, %12, %13 : vector<1x128xi32>
    %cst = arith.constant 0.000000e+00 : f32
    %15 = vector.broadcast %cst : f32 to vector<1x128xf32>
    %16 = arith.select %14, %6, %15 : vector<1x128xi1>, vector<1x128xf32>
    %c0_6 = arith.constant 0 : index
    %c0_7 = arith.constant 0 : index
    %17 = vector.load %arg6[%c0_6, %c0_7] : memref<8x128xf32, #tpu.memory_space<vmem>>, vector<1x128xf32>
    %cst_8 = arith.constant dense<0.000000e+00> : vector<128xf32>
    %18 = vector.multi_reduction <add>, %16, %cst_8 [0] : vector<1x128xf32> to vector<128xf32>
    %19 = vector.shape_cast %18 : vector<128xf32> to vector<1x128xf32>
    %20 = arith.addf %17, %19 : vector<1x128xf32>
    %c0_9 = arith.constant 0 : index
    %c0_10 = arith.constant 0 : index
    %21 = vector.load %arg6[%c0_9, %c0_10] : memref<8x128xf32, #tpu.memory_space<vmem>>, vector<1x128xf32>
    tpu.vector_store %arg6[%c0_9, %c0_10], %20 {strides = array<i32>} : memref<8x128xf32, #tpu.memory_space<vmem>>, vector<1x128xf32>,
    %c0_i32_11 = arith.constant 0 : i32
    %22 = arith.cmpi eq, %arg1, %c0_i32_11 : i32
    %23 = arith.extui %22 : i1 to i32
    %c0_i32_12 = arith.constant 0 : i32
    %24 = arith.cmpi ne, %23, %c0_i32_12 : i32
    scf.if %24 {
      %25 = tpu.iota {dimensions = array<i32: 1>} : vector<8x128xi32>
      %c4_i32 = arith.constant 4 : i32
      %c0_i32_13 = arith.constant 0 : i32
      %26 = arith.cmpi eq, %c4_i32, %c0_i32_13 : i32
      %c1_i32_14 = arith.constant 1 : i32
      %27 = arith.select %26, %c1_i32_14, %c4_i32 : i32
      %28 = vector.broadcast %27 : i32 to vector<8x128xi32>
      %29 = arith.remsi %25, %28 : vector<8x128xi32>
      %c0_i32_15 = arith.constant 0 : i32
      %30 = vector.broadcast %c0_i32_15 : i32 to vector<8x128xi32>
      %31 = arith.cmpi ne, %29, %30 : vector<8x128xi32>
      %c0_i32_16 = arith.constant 0 : i32
      %32 = vector.broadcast %c0_i32_16 : i32 to vector<8x128xi32>
      %33 = arith.cmpi slt, %29, %32 : vector<8x128xi32>
      %c0_i32_17 = arith.constant 0 : i32
      %34 = arith.cmpi slt, %27, %c0_i32_17 : i32
      %35 = vector.broadcast %34 : i1 to vector<8x128xi1>
      %36 = vector.broadcast %35 : vector<8x128xi1> to vector<8x128xi1>
      %37 = arith.xori %33, %36 : vector<8x128xi1>
      %38 = arith.andi %37, %31 : vector<8x128xi1>
      %39 = vector.broadcast %27 : i32 to vector<8x128xi32>
      %40 = arith.addi %29, %39 : vector<8x128xi32>
      %41 = arith.select %38, %40, %29 : vector<8x128xi1>, vector<8x128xi32>
      %c0_i32_18 = arith.constant 0 : i32
      %42 = vector.broadcast %c0_i32_18 : i32 to vector<8x128xi32>
      %43 = arith.cmpi eq, %41, %42 : vector<8x128xi32>
      %c0_19 = arith.constant 0 : index
      %44 = memref.load %arg2[%c0_19] : memref<4xf32, #tpu.memory_space<smem>>
      %c1_i32_20 = arith.constant 1 : i32
      %45 = vector.broadcast %c1_i32_20 : i32 to vector<8x128xi32>
      %46 = arith.cmpi eq, %41, %45 : vector<8x128xi32>
      %c1 = arith.constant 1 : index
      %47 = memref.load %arg2[%c1] : memref<4xf32, #tpu.memory_space<smem>>
      %c2_i32 = arith.constant 2 : i32
      %48 = vector.broadcast %c2_i32 : i32 to vector<8x128xi32>
      %49 = arith.cmpi eq, %41, %48 : vector<8x128xi32>
      %c2 = arith.constant 2 : index
      %50 = memref.load %arg2[%c2] : memref<4xf32, #tpu.memory_space<smem>>
      %c3 = arith.constant 3 : index
      %51 = memref.load %arg2[%c3] : memref<4xf32, #tpu.memory_space<smem>>
      %52 = vector.broadcast %50 : f32 to vector<8x128xf32>
      %53 = vector.broadcast %51 : f32 to vector<8x128xf32>
      %54 = arith.select %49, %52, %53 : vector<8x128xi1>, vector<8x128xf32>
      %55 = vector.broadcast %47 : f32 to vector<8x128xf32>
      %56 = arith.select %46, %55, %54 : vector<8x128xi1>, vector<8x128xf32>
      %57 = vector.broadcast %44 : f32 to vector<8x128xf32>
      %58 = arith.select %43, %57, %56 : vector<8x128xi1>, vector<8x128xf32>
      %c0_21 = arith.constant 0 : index
      %c0_22 = arith.constant 0 : index
      %59 = vector.load %arg6[%c0_21, %c0_22] : memref<8x128xf32, #tpu.memory_space<vmem>>, vector<8x128xf32>
      %60 = arith.mulf %59, %58 : vector<8x128xf32>
      %cst_23 = arith.constant 1.250000e-01 : f32
      %61 = vector.broadcast %cst_23 : f32 to vector<8x128xf32>
      %62 = arith.mulf %60, %61 : vector<8x128xf32>
      %c0_24 = arith.constant 0 : index
      %c0_25 = arith.constant 0 : index
      %c0_26 = arith.constant 0 : index
      %63 = vector.load %arg5[%c0_24, %c0_25, %c0_26] : memref<1x8x128xf32, #tpu.memory_space<vmem>>, vector<1x8x128xf32>
      %64 = vector.shape_cast %63 : vector<1x8x128xf32> to vector<8x128xf32>
      %65 = vector.shape_cast %62 : vector<8x128xf32> to vector<1x8x128xf32>
      tpu.vector_store %arg5[%c0_24, %c0_25, %c0_26], %65 {strides = array<i32>} : memref<1x8x128xf32, #tpu.memory_space<vmem>>, vector<1x8x128xf32>,
    } else {
    }
    return
  }
  func.func @transform_0(%arg0: i32, %arg1: i32) -> i32 {
    %c0_i32 = arith.constant 0 : i32
    %c0_i32_0 = arith.constant 0 : i32
    return %c0_i32 : i32
  }
  func.func @transform_1(%arg0: i32, %arg1: i32) -> (i32, i32) {
    %c1_i32 = arith.constant 1 : i32
    %0 = arith.muli %arg0, %c1_i32 : i32
    %1 = arith.addi %0, %arg1 : i32
    %c0_i32 = arith.constant 0 : i32
    %2 = arith.minsi %1, %c0_i32 : i32
    %c0_i32_0 = arith.constant 0 : i32
    %c0_i32_1 = arith.constant 0 : i32
    return %2, %c0_i32_0 : i32, i32
  }
  func.func @transform_2(%arg0: i32, %arg1: i32) -> (i32, i32) {
    %c1_i32 = arith.constant 1 : i32
    %0 = arith.muli %arg0, %c1_i32 : i32
    %1 = arith.addi %0, %arg1 : i32
    %c0_i32 = arith.constant 0 : i32
    %2 = arith.minsi %1, %c0_i32 : i32
    %c0_i32_0 = arith.constant 0 : i32
    %c0_i32_1 = arith.constant 0 : i32
    return %2, %c0_i32_0 : i32, i32
  }
  func.func @transform_3(%arg0: i32, %arg1: i32) -> (i32, i32, i32) {
    %c0_i32 = arith.constant 0 : i32
    %c0_i32_0 = arith.constant 0 : i32
    %c0_i32_1 = arith.constant 0 : i32
    return %arg0, %c0_i32, %c0_i32_0 : i32, i32, i32
  }
}

</mosaic_0001>

<bundles_post_ra>
// kernel: tpu_custom_call.1
= control target key start
LH: loop header
LB: loop body
LE: loop exit
PB: predicated region body
PF: predicated region fallthrough
CT: control target
= control target key end

     0   :  { %8 = vsyncpa [#allocation5], 0  ;;  %s751_s0 = inlined_call_operand.hbm [shape: f32[4], index: 0, kind: input, shape index: {}]   ;;  %s752_s1 = inlined_call_operand.vmem [shape: f32[1,128], index: 1, kind: input, shape index: {}]   ;;  %s753_s2 = inlined_call_operand.vmem [shape: f32[1,128], index: 2, kind: input, shape index: {}]   ;;  %s754_s3 = inlined_call_operand.hbm [shape: f32[2,8,128], index: 3, kind: output, shape index: {}]  }
   0x1   :  { %9 = vsyncpa [#allocation4], 0 }
   0x2   :  { %11 = vsyncpa [#allocation4 + $0x1], 0  ;;  %s605_s12 = smov 0   ;;  %s607_s13 = smov 0  }
   0x3   :  { %s609_s14 = smov 0   ;;  %s611_s15 = smov 0  }
   0x4   :  { %s613_s16 = smov 0   ;;  %s615_s17 = smov 0  }
   0x5 LB: > { %s397_s18 = sadd.s32 4294967295, %s580_s17   ;;  %s398_s19 = sadd.s32 4294967294, %s580_s17   ;;  %s580_s17 = sphi %s615_s17, %s17_s17   ;;  %s576_s16 = sphi %s613_s16, %s763_s16   ;;  %s572_s15 = sphi %s611_s15, %s762_s15   ;;  %s568_s14 = sphi %s609_s14, %s761_s14   ;;  %s564_s13 = sphi %s607_s13, %s760_s13   ;;  %s560_s12 = sphi %s605_s12, %s759_s12  }
   0x6   : > { %s29_s20 = sadd.s32 1, %s576_s16  ;;  %s121_s21 = sadd.s32 1, %s568_s14 }
   0x7   : > { %p31_p0 = scmp.ge.s32.totalorder %s29_s20, 2  ;;  %p131_p1 = scmp.ne.s32.totalorder %s568_s14, %s564_s13 }
   0x8   : > { %p132_p2 = scmp.eq.s32.totalorder %s397_s18, 1  ;;  %p137_p3 = scmp.ne.s32.totalorder %s564_s13, %s560_s12 }
   0x9   : > { %s765_s20 = smov (%p31_p0, %s29_s20), 0  ;;  %p138_p5 = scmp.eq.s32.totalorder %s398_s19, 1 }
   0xa   : > { %p645_p4 = por %p132_p2, %p131_p1  ;;  %s118_s23 = ssub.s32 %s576_s16, %s765_s20 }
   0xb   : > { %p399_p6 = scmp.ge.s32.totalorder %s580_s17, 1  ;;  %p119_p7 = scmp.eq.s32.totalorder %s118_s23, 0 }
   0xc   : > { %p652_p8 = por %p138_p5, %p137_p3  ;;  %p145_p9 = scmp.lt.s32.totalorder %s580_s17, 3 }
   0xd   : > { %s658_s25 = scalar_select %p119_p7, %s568_s14, %s121_s21  }
   0xe   : > { %p660_p10 = pnand %p399_p6, %p145_p9  ;;  %p664_p11 = scmp.eq.s32.totalorder %s397_s18, 0 }
   0xf   : > { %s485_s30 = scalar_lea.hbm %s751_s0, 16 }
  0x10   : > { %p424_p12 = pneg %p660_p10  ;;  %p486_p0 = scmp.ne.s32.totalorder %s751_s0, %s485_s30 }
  0x11   : > { %p492_p5 = scmp.lt.u32.totalorder %s485_s30, %s751_s0 }
  0x12   : > { %p425_p13 = pnand %p664_p11, %p424_p12 }
  0x14   : > { %p487_p1 = pneg %p425_p13 }
  0x16   : > { %p488_p2 = pnand %p487_p1, %p486_p0 }
  0x18   : > { %p489_p3 = pneg %p488_p2 }
  0x1a   : > { %p494_p6 = pnand %p492_p5, %p489_p3 }
  0x1c   : > { %497 = shalt.err (!%p494_p6)
}
  0x1d   : > { %s582_s8 = smov [#allocation3]   ;;  %193 = sbr.rel (%p660_p10) target bundleno = 80 (0x50), region = 32 }
  0x1e   : > { %427 = dma.hbm_to_smem (!%p425_p13), %s751_s0, 16, %s582_s8, [#allocation5]  }
  0x24   : > { %551 = dma.done.wait (%p664_p11), [#allocation5], 16  }
  0x25   : > { %553 = vsyncadd (%p664_p11), [#allocation5], 4294967280 }
  0x26   : > { %199 = sfence }
  0x27   : > { %p226_p7 = scmp.lt.s32.totalorder %s572_s15, 0  ;;  %v252_v0 = vlaneseq  ;;  %v583_v1 = vmov 0.0   ;;  %v255_v3 = vstv %s572_s15  ;;  %s411_s18 = sld [smem:[#allocation3 + $0x1]] }
  0x28   : > { %247 = vst [vmem:[#allocation2] sm:$0xff] %v583_v1  ;;  %s412_s19 = sld [smem:[#allocation3 + $0x2]]  ;;  %s413_s21 = sld [smem:[#allocation3 + $0x3]] }
  0x29   : > { %s227_s11 = scalar_select %p226_p7, %s572_s15, 0  ;;  %v253_v2 = vshrl.u32 %v252_v0, 7  ;;  %v267_v4 = vand.u32 127, %v252_v0 }
  0x2a   : > { %s281_s4 = sld [smem:[#allocation3]]  ;;  %s222_s5 = sand.u32 1, %s564_s13  }
  0x2b   : > { %s767_s11 = smov (!%p226_p7, %s227_s11), 0  ;;  %v256_v5 = vadd.s32 %v255_v3, %v253_v2  ;;  %v272_v8 = vand.u32 3, %v267_v4  ;;  %s404_s6 = sshll.u32 %s222_s5, 3 }
  0x2c   : > { %s230_s27 = scalar_lea.vmem %s752_s1, %s767_s11  ;;  %s239_s30 = scalar_lea.vmem %s753_s2, %s767_s11 }
  0x2d   : > { %v248_v6 = vld [vmem:[%s230_s27] sm:$0x1]  ;;  %vm257_vm0 = vcmp.lt.s32.totalorder %v256_v5, 1  ;;  %vm284_vm1 = vcmp.eq.s32.totalorder %v272_v8, 2  ;;  %vm282_vm2 = vcmp.eq.s32.totalorder %v272_v8, 1  ;;  %v290_v17 = vstv %s411_s18  ;;  %s224_s7 = scalar_lea.vmem [#allocation6], %s404_s6 }
  0x2e   : > { %v249_v7 = vld [vmem:[%s239_s30] sm:$0x1]  ;;  %v287_v12 = vstv %s412_s19  ;;  %v288_v13 = vstv %s413_s21  ;;  %vm280_vm3 = vcmp.eq.s32.totalorder %v272_v8, 0  ;;  %s312_s8 = sshll.u32 %s224_s7, 4  ;;  %s415_s9 = sshll.u32 %s572_s15, 7  ;;  %s701_s8 = int_to_ptr.vmem [resolvable:$true] %s312_s8 }
  0x2f   : > { %v250_v9 = vsub.f32 %v248_v6, %v249_v7  ;;  %v259_v11 = vld [vmem:[#allocation2] sm:$0x1]  ;;  %v289_v16 = vsel %vm284_vm1, %v287_v12, %v288_v13  ;;  %s706_s18 = scalar_lea.hbm %s754_s3, %s415_s9  ;;  %s299_s19 = scalar_lea.sflag [#allocation4], %s222_s5 }
  0x30   : > { %v291_v18 = vsel %vm282_vm2, %v290_v17, %v289_v16  ;;  %v292_v19 = vstv %s281_s4  ;;  %s498_s21 = scalar_lea.vmem %s701_s8, 128  ;;  %s584_s15 = smov [#allocation6]  }
  0x31   : > { %v251_v10 = vmul.f32 %v250_v9, %v250_v9  ;;  %v293_v20 = vsel %vm280_vm3, %v292_v19, %v291_v18  ;;  %p499_p9 = scmp.ne.s32.totalorder %s701_s8, %s498_s21  ;;  %s502_s23 = sshll.u32 %s584_s15, 4  ;;  %s503_s23 = int_to_ptr.vmem [resolvable:$false] %s502_s23 }
  0x32   : > { %s504_s26 = scalar_lea.vmem %s503_s23, 256  ;;  %p505_p12 = scmp.lt.s32.totalorder %s701_s8, %s503_s23 }
  0x33   : > { %v258_v14 = vsel %vm257_vm0, %v251_v10, 0.0  ;;  %p500_p10 = pnand %p499_p9, %p645_p4  ;;  %p506_p13 = scmp.lt.s32.totalorder %s504_s26, %s498_s21 }
  0x34   : > { %v261_v15 = vadd.f32 %v259_v11, %v258_v14 }
  0x35   : > { %p501_p11 = pneg %p500_p10  ;;  %p507_p0 = por %p506_p13, %p505_p12 }
  0x36   : > { %262 = vst [vmem:[#allocation2] sm:$0x1] %v261_v15 }
  0x37   : > { %p508_p1 = pnand %p507_p0, %p501_p11 }
  0x3d   : > { %v294_v21 = vld [vmem:[#allocation2] sm:$0xff] }
  0x3e   : > { %v295_v22 = vmul.f32 %v294_v21, %v293_v20 }
  0x40   : > { %v296_v23 = vmul.f32 0.125, %v295_v22 }
  0x42   : > { %297 = vst [vmem:[%s224_s7] sm:$0xff] %v296_v23 }
  0x43   : > { %511 = shalt.err (!%p508_p1)
}
  0x44   : > { %s512_s27 = scalar_lea.hbm %s706_s18, 128  ;;  %s516_s30 = scalar_lea.hbm %s754_s3, 256 }
  0x45   : > { %p513_p2 = scmp.ne.s32.totalorder %s706_s18, %s512_s27  ;;  %p517_p6 = scmp.lt.u32.totalorder %s706_s18, %s754_s3 }
  0x46   : > { %p518_p7 = scmp.lt.u32.totalorder %s516_s30, %s512_s27  ;;  %p520_p10 = scmp.lt.u32.totalorder %s512_s27, %s706_s18 }
  0x47   : > { %p514_p3 = pnand %p513_p2, %p645_p4 }
  0x48   : > { %p519_p9 = por %p518_p7, %p517_p6 }
  0x49   : > { %p515_p5 = pneg %p514_p3 }
  0x4a   : > { %p521_p11 = por %p520_p10, %p519_p9 }
  0x4c   : > { %p522_p12 = pnand %p521_p11, %p515_p5 }
  0x4e   : > { %525 = shalt.err (!%p522_p12)
}
  0x4f   : > { %422 = dma.vmem_to_hbm [thread:$0]  (%p645_p4), %s701_s8, 128, %s706_s18, %s299_s19  }
  0x50 PF: > { %p434_p13 = scmp.ge.s32.totalorder %s580_s17, 2  ;;  %s324_s6 = sand.u32 1, %s560_s12  }
  0x51   : > { %s325_s7 = scalar_lea.sflag [#allocation4], %s324_s6 }
  0x52   : > { %p429_p0 = pnand %p434_p13, %p652_p8 }
  0x54   : > { %555 = dma.done.wait (!%p429_p0), %s325_s7, 128  }
  0x55   : > { %557 = vsyncadd (!%p429_p0), %s325_s7, 4294967168  ;;  %s17_s17 = sadd.s32 1, %s580_s17   ;;  %s759_s12 = smov %s564_s13 }
  0x56   : > { %p14_p1 = scmp.ge.s32.totalorder %s17_s17, 4   ;;  %s760_s13 = smov %s568_s14 }
  0x57   : > { %s761_s14 = smov %s658_s25  ;;  %s762_s15 = smov %s576_s16 }
  0x58   : > { %s763_s16 = smov %s765_s20  ;;  %16 = sbr.rel (!%p14_p1) target bundleno = 5 (0x5), region = 83 }
  0x5f   :  { %330 = vsyncpa [#allocation4], 1 }
  0x60   :  { %332 = vsyncpa [#allocation4 + $0x1], 1 }
  0x61   :  { %333 = vsyncpa [#allocation5], 1 }
  0x62   :  { %335 = vsyncpa [#allocation5 + $0x1], 1 }

</bundles_post_ra>
